<compile_context>
chip_gen: v6e
topology: v6e:2x2x1
jax: 0.10.0
libtpu: 0.0.40
codegen_flags: <defaults>
</compile_context>

<pallas_src>
import functools

import jax
import jax.numpy as jnp
from jax.experimental import pallas as pl
from jax.experimental.pallas import tpu as pltpu


# ----------------------------------------------------------------------------
# Fused kernel: stage-1 GEMMs (one per stage-1-output parity class) -> bf16
# values resident in VMEM -> in-kernel stage-2 im2col -> stage-2 GEMM ->
# + shift -> ReLU -> lane-dense store.
# ----------------------------------------------------------------------------
def _stem_fused_kernel(p1_ref, w1_ref, sh1_ref, w2_ref, sh2_ref, cmask_ref,
                       out_ref, *, ow2: int):
    # p1_ref   : (1, 4*K1, M2) bf16   stage-1 im2col, 4 parity classes stacked
    # w1_ref   : (C_mid, K1)   bf16   conv1 weight, BN1 scale folded
    # sh1_ref  : (C_mid, 1)    f32    folded BN1 shift (includes conv1 bias)
    # w2_ref   : (C_out, K2)   bf16   conv2 weight, BN2 scale folded
    # sh2_ref  : (C_out, 1)    f32    folded BN2 shift (includes conv2 bias)
    # cmask_ref: (1, M2)       bf16   1.0 everywhere except 0.0 where ow2 == 0
    # out_ref  : (1, C_out, M2)       lane-dense output (lanes = spatial)
    k1 = p1_ref.shape[1] // 4
    m2 = p1_ref.shape[2]
    w1 = w1_ref[...]
    sh1 = sh1_ref[...]

    # ---- Stage 1: one GEMM per parity class (ph, pw) of the stage-1 output.
    # mids[2*ph+pw][c, a*OW2 + b] == relu(bn1(conv1(x)))[c, 2a+ph, 2b+pw]
    mids = []
    for q in range(4):
        acc = jnp.dot(w1, p1_ref[0, q * k1:(q + 1) * k1, :],
                      preferred_element_type=jnp.float32)
        mids.append(jnp.maximum(acc + sh1, 0.0).astype(jnp.bfloat16))

    # ---- Stage 2: build the (9*C_mid, M2) im2col operand from the resident
    # parity buffers.  Tap (kh, kw) needs the stage-1 activation at
    # (2*oh2 + kh - 1, 2*ow2 + kw - 1): that is parity class (ph, pw) with an
    # offset (dh, dw) in {-1, 0}; the offset becomes a zero-fill shift along the
    # flattened spatial (lane) axis plus a column mask when dw == -1.
    cmask = cmask_ref[...]

    def shift_right(t, k):          # out[:, m] = t[:, m - k]; 0 for m < k
        if k == 0:
            return t
        pad = jnp.zeros((t.shape[0], k), t.dtype)
        return jnp.concatenate([pad, t[:, :m2 - k]], axis=1)

    par_map = ((1, -1), (0, 0), (1, 0))          # k -> (parity, offset)
    taps = []
    for kh in range(3):
        ph, dh = par_map[kh]
        for kw in range(3):
            pw, dw = par_map[kw]
            t = shift_right(mids[2 * ph + pw], (-dh) * ow2 + (-dw))
            if dw == -1:
                t = t * cmask                    # zero the ow2 == 0 pad column
            taps.append(t)
    rhs = jnp.concatenate(taps, axis=0)          # (9*C_mid, M2) bf16

    acc2 = jnp.dot(w2_ref[...], rhs, preferred_element_type=jnp.float32)
    out_ref[0] = jnp.maximum(acc2 + sh2_ref[...], 0.0).astype(out_ref.dtype)


# ----------------------------------------------------------------------------
# Parameter folding helpers (shared by kernel wrapper and reference).
# ----------------------------------------------------------------------------
def _fold_bn(bias, gamma, beta, mean, var, eps=1e-5):
    scale = gamma / jnp.sqrt(var + eps)
    shift = (bias - mean) * scale + beta
    return scale.astype(jnp.float32), shift.astype(jnp.float32)


def _flatten_weight(w_oihw, scale):
    # (O, I, 3, 3) -> (O, 9*I) with K index = (3*kh + kw)*I + i ; BN scale
    # folded in f32 BEFORE the bf16 cast.
    o = w_oihw.shape[0]
    wf = jnp.transpose(w_oihw, (0, 2, 3, 1)).reshape(o, -1)
    return (wf * scale[:, None]).astype(jnp.bfloat16)


# ----------------------------------------------------------------------------
# HRViTStem forward (NCHW in / NCHW out, like the PyTorch module).
# ----------------------------------------------------------------------------
def hrvit_stem_forward(x_nchw, params, out_dtype=jnp.float32):
    N, C_in, H, W = x_nchw.shape
    assert H % 4 == 0 and W % 4 == 0, "H, W must be multiples of 4"
    C_mid = params["w1"].shape[0]
    C_out = params["w2"].shape[0]
    OH2, OW2 = H // 4, W // 4
    M2 = OH2 * OW2
    K1, K2 = 9 * C_in, 9 * C_mid

    s1, t1 = _fold_bn(params["b1"], params["g1"], params["be1"],
                      params["m1"], params["v1"])
    s2, t2 = _fold_bn(params["b2"], params["g2"], params["be2"],
                      params["m2"], params["v2"])
    w1f = _flatten_weight(params["w1"], s1)
    w2f = _flatten_weight(params["w2"], s2)
    sh1 = t1.reshape(C_mid, 1)
    sh2 = t2.reshape(C_out, 1)

    # Stage-1 patch layout, split by stage-1-output parity class (ph, pw).
    # One fused XLA pass; bf16 cast happens BEFORE the pad/slice/concat.
    #   p1[n, (2*ph+pw)*K1 + (3*kh+kw)*C_in + c, a*OW2 + b]
    #     = xpad[n, c, 4a + 2*ph + kh, 4b + 2*pw + kw]
    xp = jnp.pad(x_nchw.astype(jnp.bfloat16), ((0, 0), (0, 0), (1, 1), (1, 1)))
    classes = []
    for ph in range(2):
        for pw in range(2):
            taps = [xp[:, :, 2 * ph + kh::4, 2 * pw + kw::4][:, :, :OH2, :OW2]
                    for kh in range(3) for kw in range(3)]
            classes.append(jnp.concatenate(taps, axis=1))   # (N, K1, OH2, OW2)
    p1 = jnp.stack(classes, axis=1).reshape(N, 4 * K1, M2)

    # 0/1 mask over flattened stage-2 spatial positions: 0.0 where ow2 == 0.
    cmask = (jnp.arange(M2) % OW2 != 0).astype(jnp.bfloat16).reshape(1, M2)

    # Generation-aware VMEM limit (v5e/v6e: 128 MiB, v7x: 64 MiB physical).
    try:
        vmem_cap = int(pltpu.get_tpu_info().vmem_capacity_bytes)
    except Exception:
        vmem_cap = 64 * 1024 * 1024
    vmem_limit = int(min(vmem_cap // 2, 96 * 1024 * 1024))

    kernel = functools.partial(_stem_fused_kernel, ow2=OW2)

    out = pl.pallas_call(
        kernel,
        out_shape=jax.ShapeDtypeStruct((N, C_out, M2), out_dtype),
        grid=(N,),
        in_specs=[
            pl.BlockSpec((1, 4 * K1, M2), lambda n: (n, 0, 0)),
            pl.BlockSpec((C_mid, K1), lambda n: (0, 0)),     # pinned (constant)
            pl.BlockSpec((C_mid, 1), lambda n: (0, 0)),      # pinned
            pl.BlockSpec((C_out, K2), lambda n: (0, 0)),     # pinned
            pl.BlockSpec((C_out, 1), lambda n: (0, 0)),      # pinned
            pl.BlockSpec((1, M2), lambda n: (0, 0)),         # pinned
        ],
        out_specs=pl.BlockSpec((1, C_out, M2), lambda n: (n, 0, 0)),
        compiler_params=pltpu.CompilerParams(
            dimension_semantics=("parallel",),
            vmem_limit_bytes=vmem_limit),
    )(p1, w1f, sh1, w2f, sh2, cmask)

    return out.reshape(N, C_out, OH2, OW2)


# ----------------------------------------------------------------------------
# Pure-JAX reference (lax conv with the SAME folded bf16 weights, f32
# accumulation, bf16 inter-stage handoff) -- mirrors the kernel's precision.
# ----------------------------------------------------------------------------
def hrvit_stem_reference(x_nchw, p, out_dtype=jnp.float32):
    s1, t1 = _fold_bn(p["b1"], p["g1"], p["be1"], p["m1"], p["v1"])
    s2, t2 = _fold_bn(p["b2"], p["g2"], p["be2"], p["m2"], p["v2"])
    w1 = (p["w1"] * s1[:, None, None, None]).astype(jnp.bfloat16)
    w2 = (p["w2"] * s2[:, None, None, None]).astype(jnp.bfloat16)

    def stage(inp, w, shift):
        y = jax.lax.conv_general_dilated(
            inp.astype(jnp.bfloat16), w, window_strides=(2, 2),
            padding=((1, 1), (1, 1)),
            dimension_numbers=("NCHW", "OIHW", "NCHW"),
            preferred_element_type=jnp.float32)
        return jnp.maximum(y + shift.reshape(1, -1, 1, 1), 0.0)

    mid = stage(x_nchw, w1, t1).astype(jnp.bfloat16)   # mirror bf16 handoff
    out = stage(mid, w2, t2)
    return out.astype(out_dtype)


# ----------------------------------------------------------------------------
if __name__ == "__main__":
    # HRViTStem(in_channels=4, out_channels=32); x: (2, 4, 16, 16)
    in_ch, out_ch = 4, 32
    mid_ch = out_ch // 2
    N, H, W = 2, 16, 16

    key = jax.random.PRNGKey(0)
    ks = jax.random.split(key, 13)
    params = {
        # conv weights stored OIHW (cout, cin, kh, kw), like PyTorch
        "w1": jax.random.normal(ks[0], (mid_ch, in_ch, 3, 3), jnp.float32) * 0.1,
        "b1": jax.random.normal(ks[1], (mid_ch,), jnp.float32) * 0.1,
        "g1": 1.0 + 0.1 * jax.random.normal(ks[2], (mid_ch,), jnp.float32),
        "be1": 0.1 * jax.random.normal(ks[3], (mid_ch,), jnp.float32),
        "m1": 0.05 * jax.random.normal(ks[4], (mid_ch,), jnp.float32),
        "v1": 1.0 + 0.1 * jax.nn.softplus(
            jax.random.normal(ks[5], (mid_ch,), jnp.float32)),
        "w2": jax.random.normal(ks[6], (out_ch, mid_ch, 3, 3), jnp.float32) * 0.1,
        "b2": jax.random.normal(ks[7], (out_ch,), jnp.float32) * 0.1,
        "g2": 1.0 + 0.1 * jax.random.normal(ks[8], (out_ch,), jnp.float32),
        "be2": 0.1 * jax.random.normal(ks[9], (out_ch,), jnp.float32),
        "m2": 0.05 * jax.random.normal(ks[10], (out_ch,), jnp.float32),
        "v2": 1.0 + 0.1 * jax.nn.softplus(
            jax.random.normal(ks[11], (out_ch,), jnp.float32)),
    }
    x = jax.random.normal(ks[12], (N, in_ch, H, W), jnp.float32)

    out = jax.block_until_ready(jax.jit(hrvit_stem_forward)(x, params))
    assert out.shape == (N, out_ch, H // 4, W // 4), out.shape

    ref = jax.block_until_ready(hrvit_stem_reference(x, params))
    max_err = float(jnp.max(jnp.abs(out - ref)))
    assert jnp.allclose(out, ref, atol=2e-2, rtol=2e-2), max_err

    print("KERNEL_OK")
</pallas_src>

<mosaic_0001>
module attributes {stable_mosaic.version = 11 : i64} {
  func.func @_stem_fused_kernel(%arg0: i32, %arg1: memref<1x144x16xbf16, #tpu.memory_space<vmem>>, %arg2: memref<16x36xbf16, #tpu.memory_space<vmem>>, %arg3: memref<16x1xf32, #tpu.memory_space<vmem>>, %arg4: memref<32x144xbf16, #tpu.memory_space<vmem>>, %arg5: memref<32x1xf32, #tpu.memory_space<vmem>>, %arg6: memref<1x16xbf16, #tpu.memory_space<vmem>>, %arg7: memref<1x32x16xf32, #tpu.memory_space<vmem>>) attributes {dimension_semantics = [#tpu.dimension_semantics<parallel>], iteration_bounds = array<i64: 2>, scalar_prefetch = 0 : i64, scratch_operands = 0 : i64, tpu.core_type = #tpu.core_type<tc>, window_params = [{transform_indices = @transform_0, window_bounds = array<i64: 1, 144, 16>}, {pipeline_mode = #tpu.pipeline_mode<synchronous>, transform_indices = @transform_1, window_bounds = array<i64: 16, 36>}, {pipeline_mode = #tpu.pipeline_mode<synchronous>, transform_indices = @transform_2, window_bounds = array<i64: 16, 1>}, {pipeline_mode = #tpu.pipeline_mode<synchronous>, transform_indices = @transform_3, window_bounds = array<i64: 32, 144>}, {pipeline_mode = #tpu.pipeline_mode<synchronous>, transform_indices = @transform_4, window_bounds = array<i64: 32, 1>}, {pipeline_mode = #tpu.pipeline_mode<synchronous>, transform_indices = @transform_5, window_bounds = array<i64: 1, 16>}, {transform_indices = @transform_6, window_bounds = array<i64: 1, 32, 16>}]} {
    %c0 = arith.constant 0 : index
    %c0_0 = arith.constant 0 : index
    %0 = vector.load %arg2[%c0, %c0_0] : memref<16x36xbf16, #tpu.memory_space<vmem>>, vector<16x36xbf16>
    %c0_1 = arith.constant 0 : index
    %c0_2 = arith.constant 0 : index
    %1 = vector.load %arg3[%c0_1, %c0_2] : memref<16x1xf32, #tpu.memory_space<vmem>>, vector<16x1xf32>
    %c0_3 = arith.constant 0 : index
    %c0_4 = arith.constant 0 : index
    %c0_5 = arith.constant 0 : index
    %2 = vector.load %arg1[%c0_3, %c0_4, %c0_5] : memref<1x144x16xbf16, #tpu.memory_space<vmem>>, vector<1x36x16xbf16>
    %3 = vector.shape_cast %2 : vector<1x36x16xbf16> to vector<36x16xbf16>
    %cst = arith.constant dense<0.000000e+00> : vector<16x16xf32>
    %4 = tpu.matmul %0, %3, %cst {dimension_numbers = #tpu.dot_dimension_numbers<[1], [0], [0], [1], [0, 0, 1, 1], [], []>} : vector<16x36xbf16>, vector<36x16xbf16>, vector<16x16xf32> -> vector<16x16xf32>
    %5 = vector.broadcast %1 : vector<16x1xf32> to vector<16x16xf32>
    %6 = arith.addf %4, %5 : vector<16x16xf32>
    %cst_6 = arith.constant 0.000000e+00 : f32
    %7 = vector.broadcast %cst_6 : f32 to vector<16x16xf32>
    %8 = arith.maximumf %6, %7 : vector<16x16xf32>
    %9 = arith.truncf %8 : vector<16x16xf32> to vector<16x16xbf16>
    %c0_7 = arith.constant 0 : index
    %c36 = arith.constant 36 : index
    %c0_8 = arith.constant 0 : index
    %10 = vector.load %arg1[%c0_7, %c36, %c0_8] : memref<1x144x16xbf16, #tpu.memory_space<vmem>>, vector<1x36x16xbf16>
    %11 = vector.shape_cast %10 : vector<1x36x16xbf16> to vector<36x16xbf16>
    %cst_9 = arith.constant dense<0.000000e+00> : vector<16x16xf32>
    %12 = tpu.matmul %0, %11, %cst_9 {dimension_numbers = #tpu.dot_dimension_numbers<[1], [0], [0], [1], [0, 0, 1, 1], [], []>} : vector<16x36xbf16>, vector<36x16xbf16>, vector<16x16xf32> -> vector<16x16xf32>
    %13 = vector.broadcast %1 : vector<16x1xf32> to vector<16x16xf32>
    %14 = arith.addf %12, %13 : vector<16x16xf32>
    %cst_10 = arith.constant 0.000000e+00 : f32
    %15 = vector.broadcast %cst_10 : f32 to vector<16x16xf32>
    %16 = arith.maximumf %14, %15 : vector<16x16xf32>
    %17 = arith.truncf %16 : vector<16x16xf32> to vector<16x16xbf16>
    %c0_11 = arith.constant 0 : index
    %c72 = arith.constant 72 : index
    %c0_12 = arith.constant 0 : index
    %18 = vector.load %arg1[%c0_11, %c72, %c0_12] : memref<1x144x16xbf16, #tpu.memory_space<vmem>>, vector<1x36x16xbf16>
    %19 = vector.shape_cast %18 : vector<1x36x16xbf16> to vector<36x16xbf16>
    %cst_13 = arith.constant dense<0.000000e+00> : vector<16x16xf32>
    %20 = tpu.matmul %0, %19, %cst_13 {dimension_numbers = #tpu.dot_dimension_numbers<[1], [0], [0], [1], [0, 0, 1, 1], [], []>} : vector<16x36xbf16>, vector<36x16xbf16>, vector<16x16xf32> -> vector<16x16xf32>
    %21 = vector.broadcast %1 : vector<16x1xf32> to vector<16x16xf32>
    %22 = arith.addf %20, %21 : vector<16x16xf32>
    %cst_14 = arith.constant 0.000000e+00 : f32
    %23 = vector.broadcast %cst_14 : f32 to vector<16x16xf32>
    %24 = arith.maximumf %22, %23 : vector<16x16xf32>
    %25 = arith.truncf %24 : vector<16x16xf32> to vector<16x16xbf16>
    %c0_15 = arith.constant 0 : index
    %c108 = arith.constant 108 : index
    %c0_16 = arith.constant 0 : index
    %26 = vector.load %arg1[%c0_15, %c108, %c0_16] : memref<1x144x16xbf16, #tpu.memory_space<vmem>>, vector<1x36x16xbf16>
    %27 = vector.shape_cast %26 : vector<1x36x16xbf16> to vector<36x16xbf16>
    %cst_17 = arith.constant dense<0.000000e+00> : vector<16x16xf32>
    %28 = tpu.matmul %0, %27, %cst_17 {dimension_numbers = #tpu.dot_dimension_numbers<[1], [0], [0], [1], [0, 0, 1, 1], [], []>} : vector<16x36xbf16>, vector<36x16xbf16>, vector<16x16xf32> -> vector<16x16xf32>
    %29 = vector.broadcast %1 : vector<16x1xf32> to vector<16x16xf32>
    %30 = arith.addf %28, %29 : vector<16x16xf32>
    %cst_18 = arith.constant 0.000000e+00 : f32
    %31 = vector.broadcast %cst_18 : f32 to vector<16x16xf32>
    %32 = arith.maximumf %30, %31 : vector<16x16xf32>
    %33 = arith.truncf %32 : vector<16x16xf32> to vector<16x16xbf16>
    %c0_19 = arith.constant 0 : index
    %c0_20 = arith.constant 0 : index
    %34 = vector.load %arg6[%c0_19, %c0_20] : memref<1x16xbf16, #tpu.memory_space<vmem>>, vector<1x16xbf16>
    %cst_21 = arith.constant 0.000000e+00 : bf16
    %35 = vector.broadcast %cst_21 : bf16 to vector<16x5xbf16>
    %36 = vector.extract_strided_slice %33 {offsets = [0, 0], sizes = [16, 11], strides = [1, 1]} : vector<16x16xbf16> to vector<16x11xbf16>
    %37 = tpu.concatenate %35, %36 in 1 : vector<16x5xbf16>, vector<16x11xbf16> -> vector<16x16xbf16>
    %38 = vector.broadcast %34 : vector<1x16xbf16> to vector<16x16xbf16>
    %39 = arith.mulf %37, %38 : vector<16x16xbf16>
    %cst_22 = arith.constant 0.000000e+00 : bf16
    %40 = vector.broadcast %cst_22 : bf16 to vector<16x4xbf16>
    %41 = vector.extract_strided_slice %25 {offsets = [0, 0], sizes = [16, 12], strides = [1, 1]} : vector<16x16xbf16> to vector<16x12xbf16>
    %42 = tpu.concatenate %40, %41 in 1 : vector<16x4xbf16>, vector<16x12xbf16> -> vector<16x16xbf16>
    %cst_23 = arith.constant 0.000000e+00 : bf16
    %43 = vector.broadcast %cst_23 : bf16 to vector<16x4xbf16>
    %44 = vector.extract_strided_slice %33 {offsets = [0, 0], sizes = [16, 12], strides = [1, 1]} : vector<16x16xbf16> to vector<16x12xbf16>
    %45 = tpu.concatenate %43, %44 in 1 : vector<16x4xbf16>, vector<16x12xbf16> -> vector<16x16xbf16>
    %cst_24 = arith.constant 0.000000e+00 : bf16
    %46 = vector.broadcast %cst_24 : bf16 to vector<16x1xbf16>
    %47 = vector.extract_strided_slice %17 {offsets = [0, 0], sizes = [16, 15], strides = [1, 1]} : vector<16x16xbf16> to vector<16x15xbf16>
    %48 = tpu.concatenate %46, %47 in 1 : vector<16x1xbf16>, vector<16x15xbf16> -> vector<16x16xbf16>
    %49 = vector.broadcast %34 : vector<1x16xbf16> to vector<16x16xbf16>
    %50 = arith.mulf %48, %49 : vector<16x16xbf16>
    %cst_25 = arith.constant 0.000000e+00 : bf16
    %51 = vector.broadcast %cst_25 : bf16 to vector<16x1xbf16>
    %52 = vector.extract_strided_slice %33 {offsets = [0, 0], sizes = [16, 15], strides = [1, 1]} : vector<16x16xbf16> to vector<16x15xbf16>
    %53 = tpu.concatenate %51, %52 in 1 : vector<16x1xbf16>, vector<16x15xbf16> -> vector<16x16xbf16>
    %54 = vector.broadcast %34 : vector<1x16xbf16> to vector<16x16xbf16>
    %55 = arith.mulf %53, %54 : vector<16x16xbf16>
    %56 = tpu.concatenate %39, %42, %45, %50, %9, %17, %55, %25, %33 in 0 : vector<16x16xbf16>, vector<16x16xbf16>, vector<16x16xbf16>, vector<16x16xbf16>, vector<16x16xbf16>, vector<16x16xbf16>, vector<16x16xbf16>, vector<16x16xbf16>, vector<16x16xbf16> -> vector<144x16xbf16>
    %c0_26 = arith.constant 0 : index
    %c0_27 = arith.constant 0 : index
    %57 = vector.load %arg4[%c0_26, %c0_27] : memref<32x144xbf16, #tpu.memory_space<vmem>>, vector<32x144xbf16>
    %cst_28 = arith.constant dense<0.000000e+00> : vector<32x16xf32>
    %58 = tpu.matmul %57, %56, %cst_28 {dimension_numbers = #tpu.dot_dimension_numbers<[1], [0], [0], [1], [0, 0, 1, 1], [], []>} : vector<32x144xbf16>, vector<144x16xbf16>, vector<32x16xf32> -> vector<32x16xf32>
    %c0_29 = arith.constant 0 : index
    %c0_30 = arith.constant 0 : index
    %59 = vector.load %arg5[%c0_29, %c0_30] : memref<32x1xf32, #tpu.memory_space<vmem>>, vector<32x1xf32>
    %60 = vector.broadcast %59 : vector<32x1xf32> to vector<32x16xf32>
    %61 = arith.addf %58, %60 : vector<32x16xf32>
    %cst_31 = arith.constant 0.000000e+00 : f32
    %62 = vector.broadcast %cst_31 : f32 to vector<32x16xf32>
    %63 = arith.maximumf %61, %62 : vector<32x16xf32>
    %c0_32 = arith.constant 0 : index
    %c0_33 = arith.constant 0 : index
    %c0_34 = arith.constant 0 : index
    %64 = vector.load %arg7[%c0_32, %c0_33, %c0_34] : memref<1x32x16xf32, #tpu.memory_space<vmem>>, vector<1x32x16xf32>
    %65 = vector.shape_cast %64 : vector<1x32x16xf32> to vector<32x16xf32>
    %66 = vector.shape_cast %63 : vector<32x16xf32> to vector<1x32x16xf32>
    tpu.vector_store %arg7[%c0_32, %c0_33, %c0_34], %66 {strides = array<i32>} : memref<1x32x16xf32, #tpu.memory_space<vmem>>, vector<1x32x16xf32>,
    return
  }
  func.func @transform_0(%arg0: i32) -> (i32, i32, i32) {
    %c0_i32 = arith.constant 0 : i32
    %c0_i32_0 = arith.constant 0 : i32
    %c0_i32_1 = arith.constant 0 : i32
    return %arg0, %c0_i32, %c0_i32_0 : i32, i32, i32
  }
  func.func @transform_1(%arg0: i32) -> (i32, i32) {
    %c0_i32 = arith.constant 0 : i32
    %c0_i32_0 = arith.constant 0 : i32
    %c0_i32_1 = arith.constant 0 : i32
    return %c0_i32, %c0_i32_0 : i32, i32
  }
  func.func @transform_2(%arg0: i32) -> (i32, i32) {
    %c0_i32 = arith.constant 0 : i32
    %c0_i32_0 = arith.constant 0 : i32
    %c0_i32_1 = arith.constant 0 : i32
    return %c0_i32, %c0_i32_0 : i32, i32
  }
  func.func @transform_3(%arg0: i32) -> (i32, i32) {
    %c0_i32 = arith.constant 0 : i32
    %c0_i32_0 = arith.constant 0 : i32
    %c0_i32_1 = arith.constant 0 : i32
    return %c0_i32, %c0_i32_0 : i32, i32
  }
  func.func @transform_4(%arg0: i32) -> (i32, i32) {
    %c0_i32 = arith.constant 0 : i32
    %c0_i32_0 = arith.constant 0 : i32
    %c0_i32_1 = arith.constant 0 : i32
    return %c0_i32, %c0_i32_0 : i32, i32
  }
  func.func @transform_5(%arg0: i32) -> (i32, i32) {
    %c0_i32 = arith.constant 0 : i32
    %c0_i32_0 = arith.constant 0 : i32
    %c0_i32_1 = arith.constant 0 : i32
    return %c0_i32, %c0_i32_0 : i32, i32
  }
  func.func @transform_6(%arg0: i32) -> (i32, i32, i32) {
    %c0_i32 = arith.constant 0 : i32
    %c0_i32_0 = arith.constant 0 : i32
    %c0_i32_1 = arith.constant 0 : i32
    return %arg0, %c0_i32, %c0_i32_0 : i32, i32, i32
  }
}

</mosaic_0001>

<bundles_post_ra>
// kernel: hrvit_stem_forward.1
= control target key start
LH: loop header
LB: loop body
LE: loop exit
PB: predicated region body
PF: predicated region fallthrough
CT: control target
= control target key end

     0   :  { %s943_s21 = smov 0   ;;  %s1066_s0 = inlined_call_operand.vmem [shape: bf16[2,144,16], index: 0, kind: input, shape index: {}]   ;;  %s1067_s1 = inlined_call_operand.vmem [shape: bf16[16,36], index: 1, kind: input, shape index: {}]   ;;  %s1068_s2 = inlined_call_operand.vmem [shape: f32[16,1], index: 2, kind: input, shape index: {}]   ;;  %s1069_s3 = inlined_call_operand.vmem [shape: bf16[32,144], index: 3, kind: input, shape index: {}]   ;;  %s1070_s4 = inlined_call_operand.vmem [shape: f32[32,1], index: 4, kind: input, shape index: {}]   ;;  %s1071_s5 = inlined_call_operand.vmem [shape: bf16[1,16], index: 5, kind: input, shape index: {}]   ;;  %s1072_s6 = inlined_call_operand.vmem [shape: f32[2,32,16], index: 6, kind: output, shape index: {}]  }
   0x1 LB: > { %s764_s22 = sadd.s32 4294967295, %s900_s21   ;;  %p768_p0 = scmp.ge.s32.totalorder %s900_s21, 1  ;;  %s900_s21 = sphi %s943_s21, %s16_s21  }
   0x2   : > { %p212_p1 = scmp.lt.s32.totalorder %s900_s21, 3 }
   0x4   : > { %p213_p2 = pnand %p768_p0, %p212_p1 }
   0x5   : > { %p242_p3 = scmp.lt.s32.totalorder (!%p213_p2), %s764_s22, 1  ;;  %s905_s9 = smov (!%p213_p2), 4  }
   0x6   : > { %216 = sbr.rel (%p213_p2) target bundleno = 626 (0x272), region = 44  ;;  %s906_s10 = smov (!%p213_p2), 1  }
   0x7   : > { %s907_s11 = smov (!%p213_p2), 5  }
   0xb   : > { %v902_v0 = vmov 0.0   ;;  %vm903_vm0 = vmmov 0   ;;  %s1074_s22 = smov (!%p242_p3, %s764_s22), 1  ;;  %v904_v1 = vmov 0   ;;  %v255_v2 = vld [vmem:[%s1068_s2] sm:$0xff]  ;;  %v256_v3 = vld [vmem:[%s1068_s2 + $0x8] sm:$0xff] }
   0xc   : > { %818 = vmatprep.subr.bf16.mxu1 %v902_v0  ;;  %824 = vmatprep.mubr.msk.bf16.mxu1 %vm903_vm0, %v902_v0  ;;  %s858_s25 = smul.u32 72, %s1074_s22  ;;  %vm296_vm1 = vcmask 1041408   ;;  %v878_v11 = vld [vmem:[%s1067_s1] sm:$0xff]   ;;  %vm292_vm2 = vcmask 293888   ;;  %vm362_vm3 = vcmask 1045504   ;;  %vm645_vm4 = vcmask 130048  }
   0xd   : > { %873 = vset.pattern.permute.xlu0 %v904_v1  ;;  %652 = vmatprep.subr.bf16.mxu0 %v904_v1  ;;  %vm588_vm5 = vcmask 7168   ;;  %vm576_vm6 = vcmask 31744   ;;  %vm560_vm8 = vcmask 39936   ;;  %s801_s8 = sshll.u32 %s1074_s22, 5 }
   0xe   : > { %264 = vperm.xlu0 %873, %v255_v2   ;;  %874 = vset.pattern.permute.xlu1 %v904_v1  ;;  %s969_s30 = scalar_lea.vmem %s1066_s0, %s858_s25  ;;  %vm793_vm7 = vmneg %vm576_vm6 }
   0xf   : > { %v875_v4 = vld [vmem:[%s969_s30 + $0x10] ss:$0 sps:$4 sm:$0x33]   ;;  %v876_v6 = vld [vmem:[%s969_s30 + $0x8] sm:$0xff]   ;;  %v879_v7 = vld [vmem:[%s969_s30 + $0x20] ss:$0 sps:$4 sm:$0xff]  }
  0x10   : > { %v298_v5 = vsel %vm296_vm1, %v875_v4, 0  ;;  %v877_v8 = vld [vmem:[%s969_s30] sm:$0xff]   ;;  %v366_v9 = vrot.slane %v879_v7, 2  ;;  %v880_v10 = vld [vmem:[%s969_s30 + $0x18] sm:$0xff]   ;;  %v881_v14 = vld [vmem:[%s969_s30 + $0x10] sm:$0xfc]  }
  0x11   : > { %819 = vmatpush3.bf16.msra.mxu1 %v298_v5  ;;  %v364_v13 = vrot.slane %v880_v10, 2  ;;  %v363_v16 = vrot.slane %v881_v14, 2  ;;  %v882_v18 = vld [vmem:[%s969_s30 + $0x34] ss:$0 sps:$4 sm:$0x33]   ;;  %v883_v20 = vld [vmem:[%s969_s30 + $0x2c] sm:$0xff]  }
  0x12   : > { %269 = vperm.xlu0 %873, %v256_v3   ;;  %820 = vmatprep.subr.bf16.mxu1 %v902_v0  ;;  %v371_v12 = vsel %vm296_vm1, %v366_v9, 0  ;;  %v438_v19 = vsel %vm296_vm1, %v882_v18, 0  ;;  %v885_v21 = vld [vmem:[%s969_s30 + $0x44] ss:$0 sps:$4 sm:$0xff]   ;;  %v886_v24 = vld [vmem:[%s969_s30 + $0x3c] sm:$0xff]   ;;  %v605_v10 = vld [vmem:[%s1070_s4 + $0x10] sm:$0xff] }
  0x13   : > { %v367_v15 = vsel %vm362_vm3, %v364_v13, %v366_v9  ;;  %v365_v17 = vsel %vm362_vm3, %v363_v16, %v364_v13  ;;  %v884_v22 = vld [vmem:[%s969_s30 + $0x24] sm:$0xff]   ;;  %v505_v23 = vrot.slane %v885_v21, 2  ;;  %v503_v26 = vrot.slane %v886_v24, 2  ;;  %v887_v27 = vld [vmem:[%s969_s30 + $0x34] sm:$0xfc]  }
  0x14   : > { %v502_v29 = vrot.slane %v887_v27, 2  ;;  %v606_v7 = vld [vmem:[%s1070_s4 + $0x18] sm:$0xff]  ;;  %v603_v9 = vld [vmem:[%s1070_s4] sm:$0xff] }
  0x15   : > { %821 = vmatpush3.bf16.msra.mxu1 %v876_v6  ;;  %v510_v25 = vsel %vm296_vm1, %v505_v23, 0  ;;  %v506_v28 = vsel %vm362_vm3, %v503_v26, %v505_v23  ;;  %v604_v6 = vld [vmem:[%s1070_s4 + $0x8] sm:$0xff]  ;;  %v556_v13 = vld [vmem:[%s1071_s5] sm:$0x1] }
  0x16   : > { %822 = vmatprep.subr.bf16.mxu1 %v902_v0  ;;  %v504_v30 = vsel %vm362_vm3, %v502_v29, %v503_v26  ;;  %v566_v14 = vpack.i.b16 %v556_v13, %v556_v13  ;;  %v891_v29 = vld [vmem:[%s1069_s3 + $0x14] ss:$8 sps:$4 sm:$0xff]  }
  0x19   : > { %823 = vmatpush3.bf16.msra.mxu1 %v877_v8  ;;  %v890_v8 = vld [vmem:[%s1069_s3 + $0x4] ss:$8 sps:$4 sm:$0xff]  }
  0x1a   : > { %828 = vmatprep.subr.bf16.mxu1 %v902_v0  ;;  %797 = vmatprep.mubr.msk.bf16.mxu0 %vm645_vm4, %v890_v8 }
  0x1c   : > { %825 = vmatmul.mubr.msk.bf16.vlgmr.msra.gmra.mxu1 %vm292_vm2, %v878_v11 }
  0x1d   : > { %829 = vmatpush3.bf16.msra.mxu1 %v371_v12  ;;  %834 = vmatprep.mubr.msk.bf16.mxu1 %vm903_vm0, %v902_v0 }
  0x1e   : > { %830 = vmatprep.subr.bf16.mxu1 %v902_v0 }
  0x21   : > { %831 = vmatpush3.bf16.msra.mxu1 %v367_v15 }
  0x22   : > { %832 = vmatprep.subr.bf16.mxu1 %v902_v0 }
  0x25   : > { %833 = vmatpush3.bf16.msra.mxu1 %v365_v17 }
  0x26   : > { %838 = vmatprep.subr.bf16.mxu1 %v902_v0 }
  0x28   : > { %835 = vmatmul.mubr.msk.bf16.vlgmr.msra.gmra.mxu1 %vm292_vm2, %v878_v11 }
  0x29   : > { %839 = vmatpush3.bf16.msra.mxu1 %v438_v19  ;;  %844 = vmatprep.mubr.msk.bf16.mxu1 %vm903_vm0, %v902_v0 }
  0x2a   : > { %840 = vmatprep.subr.bf16.mxu1 %v902_v0 }
  0x2d   : > { %841 = vmatpush3.bf16.msra.mxu1 %v883_v20 }
  0x2e   : > { %842 = vmatprep.subr.bf16.mxu1 %v902_v0 }
  0x31   : > { %843 = vmatpush3.bf16.msra.mxu1 %v884_v22 }
  0x32   : > { %848 = vmatprep.subr.bf16.mxu1 %v902_v0 }
  0x34   : > { %845 = vmatmul.mubr.msk.bf16.vlgmr.msra.gmra.mxu1 %vm292_vm2, %v878_v11 }
  0x35   : > { %849 = vmatpush3.bf16.msra.mxu1 %v510_v25  ;;  %854 = vmatprep.mubr.msk.bf16.mxu1 %vm903_vm0, %v902_v0 }
  0x36   : > { %850 = vmatprep.subr.bf16.mxu1 %v902_v0 }
  0x39   : > { %851 = vmatpush3.bf16.msra.mxu1 %v506_v28  ;;  %v888_v28 = vld [vmem:[%s1069_s3] ss:$8 sps:$4 sm:$0xff]  }
  0x3a   : > { %852 = vmatprep.subr.bf16.mxu1 %v902_v0 }
  0x3d   : > { %853 = vmatpush3.bf16.msra.mxu1 %v504_v30  ;;  %v893_v30 = vld [vmem:[%s1069_s3 + $0x10] ss:$8 sps:$4 sm:$0xff]  }
  0x40   : > { %855 = vmatmul.mubr.msk.bf16.vlgmr.msra.gmra.mxu1 %vm292_vm2, %v878_v11  ;;  %v568_v11 = vlaneseq }
  0x42   : > { %v569_v12 = vshrl.u32 %v568_v11, 7 }
  0x44   : > { %v570_v15 = vsub.s32 0, %v569_v12 }
  0x46   : > { %v571_v16 = vrot.slane %v566_v14, %v570_v15 }
  0x89   : > { %v265_v31 = vpop.permute.xlu0 %264 }
  0x8d   : > { %v270_v34 = vpop.permute.xlu0 %269 }
  0xdc   : > { %v334_v32 = vpop.f32.mrf.mxu1 }
  0xdd   : > { %v335_v35 = vadd.f32 %v334_v32, %v265_v31 }
  0xde   : > { %v826_v33 = vpop.f32.mrf.mxu1 }
  0xdf   : > { %v341_v39 = vmax.f32 %v335_v35, 0.0 }
  0xe0   : > { %v337_v36 = vpop.f32.mrf.mxu1 }
  0xe1   : > { %v338_v37 = vadd.f32 %v337_v36, %v270_v34 }
  0xe2   : > { %v827_v38 = vpop.f32.mrf.mxu1 }
  0xe3   : > { %v342_v40 = vmax.f32 %v338_v37, 0.0 }
  0xe5   : > { %v1015_v41 = vpack.c.bf16 %v342_v40, %v341_v39 }
  0xe8   : > { %v407_v42 = vpop.f32.mrf.mxu1 }
  0xe9   : > { %v408_v62 = vadd.f32 %v407_v42, %v265_v31 }
  0xea   : > { %v836_v43 = vpop.f32.mrf.mxu1 }
  0xeb   : > { %v414_v4 = vmax.f32 %v408_v62, 0.0 }
  0xec   : > { %v410_v44 = vpop.f32.mrf.mxu1 }
  0xed   : > { %v411_v59 = vadd.f32 %v410_v44, %v270_v34 }
  0xee   : > { %v837_v45 = vpop.f32.mrf.mxu1 }
  0xef   : > { %v415_v2 = vmax.f32 %v411_v59, 0.0 }
  0xf1   : > { %v416_v5 = vpack.c.bf16 %v415_v2, %v414_v4 }
  0xf4   : > { %v474_v46 = vpop.f32.mrf.mxu1 }
  0xf5   : > { %v475_v48 = vadd.f32 %v474_v46, %v265_v31 }
  0xf6   : > { %v846_v47 = vpop.f32.mrf.mxu1 }
  0xf7   : > { %v481_v52 = vmax.f32 %v475_v48, 0.0 }
  0xf8   : > { %v477_v49 = vpop.f32.mrf.mxu1 }
  0xf9   : > { %v478_v50 = vadd.f32 %v477_v49, %v270_v34 }
  0xfa   : > { %v847_v51 = vpop.f32.mrf.mxu1 }
  0xfb   : > { %v482_v53 = vmax.f32 %v478_v50, 0.0 }
  0xfd   : > { %v483_v54 = vpack.c.bf16 %v482_v53, %v481_v52 }
  0xff   : > { %653 = vmatpush1.bf16.msra.mxu0 %v483_v54 }
 0x100   : > { %v546_v55 = vpop.f32.mrf.mxu1  ;;  %654 = vmatprep.subr.bf16.mxu0 %v904_v1 }
 0x101   : > { %v547_v57 = vadd.f32 %v546_v55, %v265_v31 }
 0x102   : > { %v856_v56 = vpop.f32.mrf.mxu1 }
 0x103   : > { %v553_v63 = vmax.f32 %v547_v57, 0.0 }
 0x104   : > { %v549_v58 = vpop.f32.mrf.mxu1 }
 0x105   : > { %v550_v60 = vadd.f32 %v549_v58, %v270_v34 }
 0x106   : > { %v857_v61 = vpop.f32.mrf.mxu1 }
 0x107   : > { %v554_v0 = vmax.f32 %v550_v60, 0.0 }
 0x109   : > { %v555_v3 = vpack.c.bf16 %v554_v0, %v553_v63 }
 0x10b   : > { %580 = vrot.lane.b32.xlu0 %v555_v3, %s905_s9  ;;  %593 = vrot.lane.b32.xlu1 %v555_v3, %s906_s10 }
 0x10f   : > { %558 = vrot.lane.b32.xlu0 %v555_v3, %s907_s11  ;;  %586 = vrot.lane.b32.xlu1 %v416_v5, %s906_s10  ;;  %s251_s11 = scalar_lea.vmem %s1072_s6, %s801_s8 }
 0x113   : > { %614 = vperm.xlu0 %873, %v604_v6   ;;  %574 = vrot.lane.b32.xlu1 %v483_v54, %s905_s9 }
 0x117   : > { %624 = vperm.xlu0 %873, %v606_v7   ;;  %609 = vperm.xlu1 %874, %v603_v9  }
 0x11b   : > { %619 = vperm.xlu1 %874, %v605_v10  }
 0x17d   : > { %v594_v17 = vpop.permute.xlu1 %593  ;;  %v581_v22 = vpop.permute.xlu0 %580 }
 0x17e   : > { %v596_v18 = vsel %vm588_vm5, 0, %v594_v17 }
 0x17f   : > { %v598_v19 = vmul.bf16 %v596_v18, %v571_v16 }
 0x181   : > { %655 = vmatpush1.bf16.msra.mxu0 %v598_v19  ;;  %v587_v20 = vpop.permute.xlu1 %586  ;;  %v559_v24 = vpop.permute.xlu0 %558 }
 0x182   : > { %656 = vmatprep.subr.bf16.mxu0 %v904_v1  ;;  %v590_v21 = vsel %vm588_vm5, 0, %v587_v20  ;;  %v563_v25 = vsel %vm560_vm8, 0, %v559_v24 }
 0x183   : > { %v592_v23 = vmul.bf16 %v590_v21, %v571_v16  ;;  %v572_v27 = vmul.bf16 %v571_v16, %v563_v25 }
 0x185   : > { %657 = vmatpush1.bf16.msra.mxu0 %v416_v5  ;;  %v575_v26 = vpop.permute.xlu1 %574 }
 0x186   : > { %658 = vmatprep.subr.bf16.mxu0 %v904_v1 }
 0x189   : > { %659 = vmatpush1.bf16.msra.mxu0 %v1015_v41 }
 0x18a   : > { %660 = vmatprep.subr.bf16.mxu0 %v904_v1 }
 0x18d   : > { %661 = vmatpush1.bf16.msra.mxu0 %v592_v23 }
 0x18e   : > { %662 = vmatprep.subr.bf16.mxu0 %v904_v1  ;;  %v615_v35 = vpop.permute.xlu0 %614 }
 0x191   : > { %794 = vmatpush1.bf16.msk.msra.mxu0 %vm793_vm7, %v581_v22 }
 0x192   : > { %664 = vmatprep.subr.bf16.mxu0 %v904_v1  ;;  %v610_v31 = vpop.permute.xlu1 %609  ;;  %v625_v45 = vpop.permute.xlu0 %624 }
 0x195   : > { %796 = vmatpush1.bf16.msk.msra.mxu0 %vm793_vm7, %v575_v26 }
 0x196   : > { %666 = vmatprep.subr.bf16.mxu0 %v904_v1  ;;  %v620_v39 = vpop.permute.xlu1 %619 }
 0x199   : > { %667 = vmatpush1.bf16.msra.mxu0 %v572_v27 }
 0x19a   : > { %682 = vmatprep.subr.bf16.mxu0 %v904_v1 }
 0x19d   : > { %683 = vmatpush2.bf16.msra.mxu0 %v555_v3 }
 0x1a0   : > { %685 = vmatmul.mubr.bf16.vlgmr.msra.gmra.mxu0 %v888_v28 }
 0x1a1   : > { %798 = vmatprep.mubr.msk.bf16.mxu0 %vm645_vm4, %v891_v29 }
 0x1a8   : > { %693 = vmatmul.mubr.bf16.gmra.mxu0 %v893_v30 }
 0x260   : > { %v686_v1 = vpop.f32.mrf.mxu0 }
 0x261   : > { %v687_v32 = vadd.f32 %v686_v1, %v610_v31 }
 0x262   : > { %v688_v33 = vpop.f32.mrf.mxu0 }
 0x263   : > { %v701_v34 = vmax.f32 %v687_v32, 0.0 }
 0x264   : > { %v689_v36 = vpop.f32.mrf.mxu0 }
 0x265   : > { %705 = vst.msk [vmem:[%s251_s11] sm:$0xff] %vm645_vm4, %v701_v34  ;;  %v690_v37 = vadd.f32 %v689_v36, %v615_v35 }
 0x266   : > { %v691_v38 = vpop.f32.mrf.mxu0 }
 0x267   : > { %v702_v40 = vmax.f32 %v690_v37, 0.0 }
 0x268   : > { %v694_v41 = vpop.f32.mrf.mxu0 }
 0x269   : > { %706 = vst.msk [vmem:[%s251_s11 + $0x8] sm:$0xff] %vm645_vm4, %v702_v40  ;;  %v695_v42 = vadd.f32 %v694_v41, %v620_v39 }
 0x26a   : > { %v696_v43 = vpop.f32.mrf.mxu0 }
 0x26b   : > { %v703_v44 = vmax.f32 %v695_v42, 0.0 }
 0x26c   : > { %v697_v46 = vpop.f32.mrf.mxu0 }
 0x26d   : > { %707 = vst.msk [vmem:[%s251_s11 + $0x10] sm:$0xff] %vm645_vm4, %v703_v44  ;;  %v698_v47 = vadd.f32 %v697_v46, %v625_v45 }
 0x26e   : > { %v699_v48 = vpop.f32.mrf.mxu0 }
 0x26f   : > { %v704_v49 = vmax.f32 %v698_v47, 0.0 }
 0x271   : > { %708 = vst.msk [vmem:[%s251_s11 + $0x18] sm:$0xff] %vm645_vm4, %v704_v49 }
 0x272 PF: > { %s16_s21 = sadd.s32 1, %s900_s21  }
 0x273   : > { %p13_p4 = scmp.ge.s32.totalorder %s16_s21, 4  }
 0x275   :  { %15 = sbr.rel (!%p13_p4) target bundleno = 1 (0x1), region = 74 }

</bundles_post_ra>
